<compile_context>
chip_gen: v7x
topology: tpu7x:2x2x1
jax: 0.10.0
libtpu: 0.0.40
codegen_flags: <defaults>
</compile_context>

<pallas_src>
import functools

import jax
import jax.numpy as jnp
from jax.experimental import pallas as pl
from jax.experimental.pallas import tpu as pltpu


def _attention_kernel(x_ref, wqkv_ref, wo_ref, bout_ref, o_ref, acc_ref,
                      *, block_b, seq_len):
    """Grid = (batch_blocks [parallel], heads [arbitrary])."""
    h = pl.program_id(1)
    m, dim = x_ref.shape                       # m = block_b * seq_len
    dh = wo_ref.shape[1]

    @pl.when(h == 0)
    def _init():
        acc_ref[...] = jnp.zeros_like(acc_ref)

    x = x_ref[...]                             # (M, DIM) bf16 (cast host-side)

    # Fused q/k/v projection for this head: one wide matmul, f32 accumulation.
    # Scale is already folded into the q columns of wqkv.
    qkv = jnp.dot(x, wqkv_ref[0],              # (DIM, 3*dh) bf16
                  preferred_element_type=jnp.float32)           # (M, 3*dh) f32

    q = qkv[:, 0 * dh:1 * dh].reshape(block_b, seq_len, dh).astype(jnp.bfloat16)
    k = qkv[:, 1 * dh:2 * dh].reshape(block_b, seq_len, dh).astype(jnp.bfloat16)
    v = qkv[:, 2 * dh:3 * dh].reshape(block_b, seq_len, dh).astype(jnp.bfloat16)

    # Batched score matmul contracting the last dims -> no k transpose/relayout.
    dots = jnp.einsum('bqd,bkd->bqk', q, k,
                      preferred_element_type=jnp.float32)       # (bb, n, n) f32

    # Numerically-stable softmax in f32; reciprocal on the EUP.
    mmax = jnp.max(dots, axis=-1, keepdims=True)
    p = jnp.exp(dots - mmax)
    attn = p * pl.reciprocal(jnp.sum(p, axis=-1, keepdims=True), approx=True)

    oh = jnp.einsum('bqk,bkd->bqd', attn.astype(jnp.bfloat16), v,
                    preferred_element_type=jnp.float32)         # (bb, n, dh) f32

    # Accumulate this head's contribution to the output projection.
    acc_ref[...] += jnp.dot(oh.reshape(m, dh).astype(jnp.bfloat16),
                            wo_ref[0],                          # (dh, DIM) bf16
                            preferred_element_type=jnp.float32)

    @pl.when(h == pl.num_programs(1) - 1)
    def _finalize():
        o_ref[...] = (acc_ref[...] + bout_ref[...]).astype(o_ref.dtype)


def _pick_block_b(batch, seq, target_rows=512):
    """Largest divisor of `batch` with block_b*seq <= target_rows, capped at
    batch//2 so the grid has >= 2 batch steps (keeps both v7x TCs busy)."""
    cap = max(1, batch // 2)
    bb = 1
    for cand in range(1, cap + 1):
        if batch % cand == 0 and cand * seq <= target_rows:
            bb = cand
    return bb


def prepare_attention_params(w_qkv, w_out, b_out, *, heads, dim_head):
    """One-time weight layout plumbing (hoisted out of the per-call wrapper).

    w_qkv : (DIM, 3*inner)  torch to_qkv.weight.T
    w_out : (inner, DIM)    torch to_out[0].weight.T
    b_out : (DIM,)          torch to_out[0].bias
    Returns:
      wqkv_h : (H, DIM, 3*dh) bf16, with the softmax scale folded into q cols
      wo_h   : (H, dh, DIM)   bf16
      b2     : (1, DIM)       f32
    """
    DIM = w_qkv.shape[0]
    inner = heads * dim_head
    assert w_qkv.shape == (DIM, 3 * inner)
    assert w_out.shape == (inner, DIM)
    scale = float(dim_head) ** (-0.5)

    wq = w_qkv[:, 0 * inner:1 * inner].reshape(DIM, heads, dim_head) * scale
    wk = w_qkv[:, 1 * inner:2 * inner].reshape(DIM, heads, dim_head)
    wv = w_qkv[:, 2 * inner:3 * inner].reshape(DIM, heads, dim_head)
    wqkv_h = jnp.transpose(jnp.concatenate([wq, wk, wv], axis=-1),
                           (1, 0, 2)).astype(jnp.bfloat16)      # (H, DIM, 3*dh)
    wo_h = w_out.reshape(heads, dim_head, DIM).astype(jnp.bfloat16)
    b2 = b_out.reshape(1, DIM).astype(jnp.float32)
    return wqkv_h, wo_h, b2


def attention_pallas(x, wqkv_h, wo_h, b_out2d, *, heads, dim_head,
                     block_b=None, out_dtype=None):
    """x: (B, N, DIM). Weights pre-laid-out by prepare_attention_params."""
    B, N, DIM = x.shape
    assert wqkv_h.shape == (heads, DIM, 3 * dim_head)
    assert wo_h.shape == (heads, dim_head, DIM)
    assert b_out2d.shape == (1, DIM)
    out_dtype = out_dtype or x.dtype

    if block_b is None:
        block_b = _pick_block_b(B, N)
    assert B % block_b == 0
    m = block_b * N
    # (8,128) block constraint on the row dim of the (m, DIM) x/out slabs.
    # TODO(synk): pad N to a multiple of 8 for sequences that violate this.
    assert m % 8 == 0 or m == B * N, "block rows must be a multiple of 8"

    # Activations stream as bf16 (halves HBM DMA bytes and VMEM footprint);
    # accumulation stays f32 inside the kernel.
    x2 = x.reshape(B * N, DIM).astype(jnp.bfloat16)

    kernel = functools.partial(_attention_kernel, block_b=block_b, seq_len=N)
    grid = (B // block_b, heads)

    out2 = pl.pallas_call(
        kernel,
        out_shape=jax.ShapeDtypeStruct((B * N, DIM), out_dtype),
        grid_spec=pltpu.PrefetchScalarGridSpec(
            num_scalar_prefetch=0,
            grid=grid,
            in_specs=[
                pl.BlockSpec((m, DIM), lambda b, h: (b, 0)),            # x
                pl.BlockSpec((1, DIM, 3 * dim_head),
                             lambda b, h: (h, 0, 0)),                   # fused wqkv
                pl.BlockSpec((1, dim_head, DIM), lambda b, h: (h, 0, 0)),  # wo
                pl.BlockSpec((1, DIM), lambda b, h: (0, 0)),            # bias
            ],
            out_specs=pl.BlockSpec((m, DIM), lambda b, h: (b, 0)),
            scratch_shapes=[pltpu.VMEM((m, DIM), jnp.float32)],         # y accumulator
        ),
        compiler_params=pltpu.CompilerParams(
            dimension_semantics=("parallel", "arbitrary"),
            # Lifts v5e's 16 MiB scoped default; safely below v7x's 64 MiB physical.
            vmem_limit_bytes=32 * 1024 * 1024,
        ),
    )(x2, wqkv_h, wo_h, b_out2d)
    # TODO(synk): for DIM not a multiple of 128, a lane-dense (.., 128) output
    # view would avoid masked vst; skipped to keep one robust store path.
    return out2.reshape(B, N, DIM)


def attention_reference(x, w_qkv, w_out, b_out, *, heads, dim_head):
    """Pure-JAX reference mirroring the PyTorch forward pass, with the same
    bf16-operand / f32-accumulation matmul convention as the kernel."""
    B, N, DIM = x.shape
    inner = heads * dim_head
    scale = float(dim_head) ** (-0.5)

    xb = x.astype(jnp.bfloat16)
    qkv = jnp.dot(xb.reshape(B * N, DIM), w_qkv.astype(jnp.bfloat16),
                  preferred_element_type=jnp.float32).reshape(B, N, 3 * inner)
    q, k, v = jnp.split(qkv, 3, axis=-1)

    def to_heads(t):
        return t.reshape(B, N, heads, dim_head).transpose(0, 2, 1, 3)   # b h n d

    q, k, v = map(to_heads, (q, k, v))
    dots = jnp.einsum('bhid,bhjd->bhij',
                      q.astype(jnp.bfloat16), k.astype(jnp.bfloat16),
                      preferred_element_type=jnp.float32) * scale
    attn = jax.nn.softmax(dots, axis=-1)
    out = jnp.einsum('bhij,bhjd->bhid',
                     attn.astype(jnp.bfloat16), v.astype(jnp.bfloat16),
                     preferred_element_type=jnp.float32)                # (B, H, N, d)
    out = out.transpose(0, 2, 1, 3).reshape(B, N, inner)                # b n (h d)
    y = jnp.dot(out.astype(jnp.bfloat16).reshape(B * N, inner),
                w_out.astype(jnp.bfloat16),
                preferred_element_type=jnp.float32).reshape(B, N, DIM)
    return y + b_out[None, None, :]


if __name__ == "__main__":
    # Small shapes consistent with the module's forward pass.
    B, N, DIM = 2, 8, 32
    HEADS, DIM_HEAD = 2, 32          # inner_dim = 64, project_out=True
    INNER = HEADS * DIM_HEAD

    key = jax.random.PRNGKey(0)
    kx, kqkv, kwo, kbo = jax.random.split(key, 4)

    x = jax.random.normal(kx, (B, N, DIM), dtype=jnp.float32)
    # Deterministic synthetic parameters (torch Linear weight.T layout).
    w_qkv = jax.random.normal(kqkv, (DIM, 3 * INNER), dtype=jnp.float32) * 0.05
    w_out = jax.random.normal(kwo, (INNER, DIM), dtype=jnp.float32) * 0.05
    b_out = jax.random.normal(kbo, (DIM,), dtype=jnp.float32) * 0.05
    # TODO(synk): nn.Dropout(p=0.0) is an identity at eval; no stochastic path implemented.

    # One-time weight layout (hoisted out of the per-call wrapper).
    wqkv_h, wo_h, b2 = prepare_attention_params(
        w_qkv, w_out, b_out, heads=HEADS, dim_head=DIM_HEAD)

    out = attention_pallas(x, wqkv_h, wo_h, b2, heads=HEADS, dim_head=DIM_HEAD)
    out = jax.block_until_ready(out)

    ref = attention_reference(x, w_qkv, w_out, b_out,
                              heads=HEADS, dim_head=DIM_HEAD)
    assert out.shape == (B, N, DIM)
    # bf16 MXU operands + scale folded into wq + approx reciprocal =>
    # compare at a bf16-appropriate tolerance.
    assert jnp.allclose(out, ref, atol=1e-2, rtol=1e-2), "mismatch vs reference"

    print("KERNEL_OK")
</pallas_src>

<mosaic_0001>
module attributes {stable_mosaic.version = 11 : i64} {
  func.func @_attention_kernel(%arg0: i32, %arg1: i32, %arg2: memref<8x32xbf16, #tpu.memory_space<vmem>>, %arg3: memref<1x32x96xbf16, #tpu.memory_space<vmem>>, %arg4: memref<1x32x32xbf16, #tpu.memory_space<vmem>>, %arg5: memref<1x32xf32, #tpu.memory_space<vmem>>, %arg6: memref<8x32xf32, #tpu.memory_space<vmem>>, %arg7: memref<8x32xf32, #tpu.memory_space<vmem>>) attributes {dimension_semantics = [#tpu.dimension_semantics<parallel>, #tpu.dimension_semantics<arbitrary>], iteration_bounds = array<i64: 2, 2>, scalar_prefetch = 0 : i64, scratch_operands = 1 : i64, tpu.core_type = #tpu.core_type<tc>, window_params = [{transform_indices = @transform_0, window_bounds = array<i64: 8, 32>}, {transform_indices = @transform_1, window_bounds = array<i64: 1, 32, 96>}, {transform_indices = @transform_2, window_bounds = array<i64: 1, 32, 32>}, {pipeline_mode = #tpu.pipeline_mode<synchronous>, transform_indices = @transform_3, window_bounds = array<i64: 1, 32>}, {transform_indices = @transform_4, window_bounds = array<i64: 8, 32>}]} {
    %c0_i32 = arith.constant 0 : i32
    %0 = arith.cmpi eq, %arg1, %c0_i32 : i32
    %1 = arith.extui %0 : i1 to i32
    %c0_i32_0 = arith.constant 0 : i32
    %2 = arith.cmpi ne, %1, %c0_i32_0 : i32
    scf.if %2 {
      %cst_18 = arith.constant 0.000000e+00 : f32
      %40 = vector.broadcast %cst_18 : f32 to vector<8x32xf32>
      %c0_19 = arith.constant 0 : index
      %c0_20 = arith.constant 0 : index
      %41 = vector.load %arg7[%c0_19, %c0_20] : memref<8x32xf32, #tpu.memory_space<vmem>>, vector<8x32xf32>
      tpu.vector_store %arg7[%c0_19, %c0_20], %40 {strides = array<i32>} : memref<8x32xf32, #tpu.memory_space<vmem>>, vector<8x32xf32>,
    } else {
    }
    %c0 = arith.constant 0 : index
    %c0_1 = arith.constant 0 : index
    %3 = vector.load %arg2[%c0, %c0_1] : memref<8x32xbf16, #tpu.memory_space<vmem>>, vector<8x32xbf16>
    %c0_2 = arith.constant 0 : index
    %c0_3 = arith.constant 0 : index
    %c0_4 = arith.constant 0 : index
    %4 = vector.load %arg3[%c0_2, %c0_3, %c0_4] : memref<1x32x96xbf16, #tpu.memory_space<vmem>>, vector<1x32x96xbf16>
    %5 = vector.shape_cast %4 : vector<1x32x96xbf16> to vector<32x96xbf16>
    %cst = arith.constant dense<0.000000e+00> : vector<8x96xf32>
    %6 = tpu.matmul %3, %5, %cst {dimension_numbers = #tpu.dot_dimension_numbers<[1], [0], [0], [1], [0, 0, 1, 1], [], []>} : vector<8x32xbf16>, vector<32x96xbf16>, vector<8x96xf32> -> vector<8x96xf32>
    %7 = vector.extract_strided_slice %6 {offsets = [0, 0], sizes = [8, 32], strides = [1, 1]} : vector<8x96xf32> to vector<8x32xf32>
    %8 = vector.shape_cast %7 : vector<8x32xf32> to vector<1x8x32xf32>
    %9 = arith.truncf %8 : vector<1x8x32xf32> to vector<1x8x32xbf16>
    %10 = vector.extract_strided_slice %6 {offsets = [0, 32], sizes = [8, 32], strides = [1, 1]} : vector<8x96xf32> to vector<8x32xf32>
    %11 = vector.shape_cast %10 : vector<8x32xf32> to vector<1x8x32xf32>
    %12 = arith.truncf %11 : vector<1x8x32xf32> to vector<1x8x32xbf16>
    %13 = vector.extract_strided_slice %6 {offsets = [0, 64], sizes = [8, 32], strides = [1, 1]} : vector<8x96xf32> to vector<8x32xf32>
    %14 = vector.shape_cast %13 : vector<8x32xf32> to vector<1x8x32xf32>
    %15 = arith.truncf %14 : vector<1x8x32xf32> to vector<1x8x32xbf16>
    "tpu.trace_start"() <{level = 10 : i32, message = "bqd,bkd->bqk"}> : () -> ()
    %cst_5 = arith.constant dense<0.000000e+00> : vector<1x8x8xf32>
    %16 = tpu.matmul %9, %12, %cst_5 {dimension_numbers = #tpu.dot_dimension_numbers<[2], [2], [1], [1], [0, 0, 0, 1, 1, 1], [0], [0]>} : vector<1x8x32xbf16>, vector<1x8x32xbf16>, vector<1x8x8xf32> -> vector<1x8x8xf32>
    "tpu.trace_stop"() : () -> ()
    %cst_6 = arith.constant dense<0xFF800000> : vector<1x8xf32>
    %17 = vector.multi_reduction <maximumf>, %16, %cst_6 [2] : vector<1x8x8xf32> to vector<1x8xf32>
    %18 = vector.shape_cast %17 : vector<1x8xf32> to vector<1x8x1xf32>
    %19 = vector.broadcast %18 : vector<1x8x1xf32> to vector<1x8x8xf32>
    %20 = arith.subf %16, %19 : vector<1x8x8xf32>
    %21 = math.exp %20 : vector<1x8x8xf32>
    %cst_7 = arith.constant dense<0.000000e+00> : vector<1x8xf32>
    %22 = vector.multi_reduction <add>, %21, %cst_7 [2] : vector<1x8x8xf32> to vector<1x8xf32>
    %23 = vector.shape_cast %22 : vector<1x8xf32> to vector<1x8x1xf32>
    %24 = tpu.reciprocal %23 {approx = true} : vector<1x8x1xf32> -> vector<1x8x1xf32>
    %25 = vector.broadcast %24 : vector<1x8x1xf32> to vector<1x8x8xf32>
    %26 = arith.mulf %21, %25 : vector<1x8x8xf32>
    %27 = arith.truncf %26 : vector<1x8x8xf32> to vector<1x8x8xbf16>
    "tpu.trace_start"() <{level = 10 : i32, message = "bqk,bkd->bqd"}> : () -> ()
    %cst_8 = arith.constant dense<0.000000e+00> : vector<1x8x32xf32>
    %28 = tpu.matmul %27, %15, %cst_8 {dimension_numbers = #tpu.dot_dimension_numbers<[2], [1], [1], [2], [0, 0, 0, 1, 1, 2], [0], [0]>} : vector<1x8x8xbf16>, vector<1x8x32xbf16>, vector<1x8x32xf32> -> vector<1x8x32xf32>
    "tpu.trace_stop"() : () -> ()
    %c0_9 = arith.constant 0 : index
    %c0_10 = arith.constant 0 : index
    %29 = vector.load %arg7[%c0_9, %c0_10] : memref<8x32xf32, #tpu.memory_space<vmem>>, vector<8x32xf32>
    %30 = vector.shape_cast %28 : vector<1x8x32xf32> to vector<8x32xf32>
    %31 = arith.truncf %30 : vector<8x32xf32> to vector<8x32xbf16>
    %c0_11 = arith.constant 0 : index
    %c0_12 = arith.constant 0 : index
    %c0_13 = arith.constant 0 : index
    %32 = vector.load %arg4[%c0_11, %c0_12, %c0_13] : memref<1x32x32xbf16, #tpu.memory_space<vmem>>, vector<1x32x32xbf16>
    %33 = vector.shape_cast %32 : vector<1x32x32xbf16> to vector<32x32xbf16>
    %cst_14 = arith.constant dense<0.000000e+00> : vector<8x32xf32>
    %34 = tpu.matmul %31, %33, %cst_14 {dimension_numbers = #tpu.dot_dimension_numbers<[1], [0], [0], [1], [0, 0, 1, 1], [], []>} : vector<8x32xbf16>, vector<32x32xbf16>, vector<8x32xf32> -> vector<8x32xf32>
    %35 = arith.addf %29, %34 : vector<8x32xf32>
    %c0_15 = arith.constant 0 : index
    %c0_16 = arith.constant 0 : index
    %36 = vector.load %arg7[%c0_15, %c0_16] : memref<8x32xf32, #tpu.memory_space<vmem>>, vector<8x32xf32>
    tpu.vector_store %arg7[%c0_15, %c0_16], %35 {strides = array<i32>} : memref<8x32xf32, #tpu.memory_space<vmem>>, vector<8x32xf32>,
    %c1_i32 = arith.constant 1 : i32
    %37 = arith.cmpi eq, %arg1, %c1_i32 : i32
    %38 = arith.extui %37 : i1 to i32
    %c0_i32_17 = arith.constant 0 : i32
    %39 = arith.cmpi ne, %38, %c0_i32_17 : i32
    scf.if %39 {
      %c0_18 = arith.constant 0 : index
      %c0_19 = arith.constant 0 : index
      %40 = vector.load %arg7[%c0_18, %c0_19] : memref<8x32xf32, #tpu.memory_space<vmem>>, vector<8x32xf32>
      %c0_20 = arith.constant 0 : index
      %c0_21 = arith.constant 0 : index
      %41 = vector.load %arg5[%c0_20, %c0_21] : memref<1x32xf32, #tpu.memory_space<vmem>>, vector<1x32xf32>
      %42 = vector.broadcast %41 : vector<1x32xf32> to vector<8x32xf32>
      %43 = arith.addf %40, %42 : vector<8x32xf32>
      %c0_22 = arith.constant 0 : index
      %c0_23 = arith.constant 0 : index
      %44 = vector.load %arg6[%c0_22, %c0_23] : memref<8x32xf32, #tpu.memory_space<vmem>>, vector<8x32xf32>
      tpu.vector_store %arg6[%c0_22, %c0_23], %43 {strides = array<i32>} : memref<8x32xf32, #tpu.memory_space<vmem>>, vector<8x32xf32>,
    } else {
    }
    return
  }
  func.func @transform_0(%arg0: i32, %arg1: i32) -> (i32, i32) {
    %c0_i32 = arith.constant 0 : i32
    %c0_i32_0 = arith.constant 0 : i32
    return %arg0, %c0_i32 : i32, i32
  }
  func.func @transform_1(%arg0: i32, %arg1: i32) -> (i32, i32, i32) {
    %c0_i32 = arith.constant 0 : i32
    %c0_i32_0 = arith.constant 0 : i32
    %c0_i32_1 = arith.constant 0 : i32
    return %arg1, %c0_i32, %c0_i32_0 : i32, i32, i32
  }
  func.func @transform_2(%arg0: i32, %arg1: i32) -> (i32, i32, i32) {
    %c0_i32 = arith.constant 0 : i32
    %c0_i32_0 = arith.constant 0 : i32
    %c0_i32_1 = arith.constant 0 : i32
    return %arg1, %c0_i32, %c0_i32_0 : i32, i32, i32
  }
  func.func @transform_3(%arg0: i32, %arg1: i32) -> (i32, i32) {
    %c0_i32 = arith.constant 0 : i32
    %c0_i32_0 = arith.constant 0 : i32
    %c0_i32_1 = arith.constant 0 : i32
    return %c0_i32, %c0_i32_0 : i32, i32
  }
  func.func @transform_4(%arg0: i32, %arg1: i32) -> (i32, i32) {
    %c0_i32 = arith.constant 0 : i32
    %c0_i32_0 = arith.constant 0 : i32
    return %arg0, %c0_i32 : i32, i32
  }
}

</mosaic_0001>

<bundles_post_ra>
// kernel: tpu_custom_call.1
= control target key start
LH: loop header
LB: loop body
LE: loop exit
PB: predicated region body
PF: predicated region fallthrough
CT: control target
= control target key end

     0   :  { %s1527_s0 = inlined_call_operand.hbm [shape: bf16[16,32], index: 0, kind: input, shape index: {}]   ;;  %s1528_s1 = inlined_call_operand.hbm [shape: bf16[2,32,96], index: 1, kind: input, shape index: {}]   ;;  %s1529_s2 = inlined_call_operand.hbm [shape: bf16[2,32,32], index: 2, kind: input, shape index: {}]   ;;  %s1530_s3 = inlined_call_operand.vmem [shape: f32[1,32], index: 3, kind: input, shape index: {}]   ;;  %s1531_s4 = inlined_call_operand.hbm [shape: f32[16,32], index: 4, kind: output, shape index: {}]  }
   0x1   :  { %1547 = sst [smem:[#allocation20_spill]] %s1528_s1 }
   0x2   :  { %1548 = sst [smem:[#allocation21_spill]] %s1531_s4 }
   0x3   :  { %9 = vsyncpa [#allocation4], 0 }
   0x4   :  { %11 = vsyncpa [#allocation4 + $0x1], 0 }
   0x5   :  { %12 = vsyncpa [#allocation7], 0 }
   0x6   :  { %14 = vsyncpa [#allocation7 + $0x1], 0 }
   0x7   :  { %15 = vsyncpa [#allocation5], 0 }
   0x8   :  { %17 = vsyncpa [#allocation5 + $0x1], 0  ;;  %s1150_s15 = smov 0   ;;  %s1152_s16 = smov 0  }
   0x9   :  { %s1154_s17 = smov 0   ;;  %s1156_s18 = smov 0  }
   0xa   :  { %s1158_s19 = smov 0   ;;  %s1160_s20 = smov 0  }
   0xb   :  { %s1162_s21 = smov 0   ;;  %s1164_s22 = smov 0  }
   0xc   :  { %s1166_s23 = smov 0   ;;  %s1168_s24 = smov 0  }
   0xd   :  { %s1170_s25 = smov 0  }
   0xe LB: > { %1549 = sst [smem:[#allocation13_spill]] %s1080_s17  ;;  %s32_s26 = sadd.s32 1, %s1104_s23  ;;  %s1112_s25 = sphi %s1170_s25, %s23_s25   ;;  %s1108_s24 = sphi %s1168_s24, %s1585_s24   ;;  %s1104_s23 = sphi %s1166_s23, %s1591_s23   ;;  %s1100_s22 = sphi %s1164_s22, %s1583_s22   ;;  %s1096_s21 = sphi %s1162_s21, %s1582_s21   ;;  %s1092_s20 = sphi %s1160_s20, %s1590_s20   ;;  %s1088_s19 = sphi %s1158_s19, %s1589_s19   ;;  %s1084_s18 = sphi %s1156_s18, %s1588_s18   ;;  %s1080_s17 = sphi %s1154_s17, %s1581_s17   ;;  %s1076_s16 = sphi %s1152_s16, %s1587_s16   ;;  %s1072_s15 = sphi %s1150_s15, %s1586_s15  }
   0xf   : > { %1550 = sst [smem:[#allocation14_spill]] %s1100_s22  ;;  %p1534_p0 = scmp.eq.s32.totalorder %s1112_s25, 0 }
  0x10   : > { %1551 = sst [smem:[#allocation15_spill]] %s1104_s23  ;;  %p1207_p1 = scmp.ge.s32.totalorder %s32_s26, 2 }
  0x11   : > { %1552 = sst [smem:[#allocation16_spill]] %s1108_s24  ;;  %s68_s28 = sadd.s32 1, %s1080_s17 }
  0x12   : > { %p75_p2 = scmp.ne.s32.totalorder %s1080_s17, %s1076_s16  ;;  %s1593_s26 = smov (%p1207_p1, %s32_s26), 0 }
  0x13   : > { %1554 = sst [smem:[#allocation17_spill]] %s1593_s26  ;;  %s65_s29 = ssub.s32 %s1104_s23, %s1593_s26 }
  0x14   : > { %p77_p3 = por %p75_p2, %p1534_p0  ;;  %p1533_p4 = scmp.lt.s32.totalorder %s1112_s25, 4 }
  0x15   : > { %p66_p5 = scmp.eq.s32.totalorder %s65_s29, 0  ;;  %s199_s30 = sand.u32 1, %s1112_s25  }
  0x16   : > { %s201_s5 = sand.u32 1, %s1080_s17   ;;  %s1532_s8 = sshll.u32 %s1104_s23, 8 }
  0x17   : > { %s1226_s6 = scalar_select %p66_p5, %s1080_s17, %s68_s28  }
  0x18   : > { %s1228_s7 = sshll.u32 %s201_s5, 4  ;;  %s1556_s1 = sld [smem:[#allocation20_spill]] }
  0x19   : > { %1555 = sst [smem:[#allocation18_spill]] %s1226_s6  ;;  %s203_s12 = scalar_lea.vmem [#allocation6], %s1228_s7 }
  0x1a   : > { %s210_s13 = sshll.u32 %s203_s12, 4  ;;  %p1241_p6 = pnand %p1533_p4, %p77_p3  ;;  %s1245_s13 = int_to_ptr.vmem [resolvable:$true] %s210_s13 }
  0x1b   : > { %s1247_s28 = scalar_lea.sflag [#allocation7], %s199_s30 }
  0x1c   : > { %p1536_p8 = pneg %p1241_p6 }
  0x1e   : > { %s1236_s11 = scalar_lea.hbm %s1556_s1, %s1532_s8  ;;  %s901_s10 = scalar_lea.hbm %s1556_s1, 512 }
  0x1f   : > { %s896_s29 = scalar_lea.hbm %s1236_s11, 256  ;;  %p902_p11 = scmp.lt.u32.totalorder %s1236_s11, %s1556_s1 }
  0x20   : > { %p897_p7 = scmp.ne.s32.totalorder %s1236_s11, %s896_s29  ;;  %p903_p12 = scmp.lt.u32.totalorder %s901_s10, %s896_s29 }
  0x21   : > { %p905_p2 = scmp.lt.u32.totalorder %s896_s29, %s1236_s11 }
  0x22   : > { %p899_p9 = pnand %p1536_p8, %p897_p7  ;;  %p904_p13 = por %p903_p12, %p902_p11 }
  0x24   : > { %p900_p10 = pneg %p899_p9  ;;  %p906_p3 = por %p905_p2, %p904_p13 }
  0x26   : > { %p907_p5 = pnand %p906_p3, %p900_p10 }
  0x28   : > { %910 = shalt.err (!%p907_p5)
}
  0x29   : > { %s911_s30 = scalar_lea.vmem %s1245_s13, 256  ;;  %s1114_s5 = smov [#allocation6]  }
  0x2a   : > { %p912_p7 = scmp.ne.s32.totalorder %s1245_s13, %s911_s30  ;;  %s916_s9 = sshll.u32 %s1114_s5, 4  ;;  %s917_s9 = int_to_ptr.vmem [resolvable:$false] %s916_s9 }
  0x2b   : > { %s918_s8 = scalar_lea.vmem %s917_s9, 512  ;;  %p919_p0 = scmp.lt.s32.totalorder %s1245_s13, %s917_s9 }
  0x2c   : > { %p914_p9 = pnand %p912_p7, %p1536_p8  ;;  %p920_p11 = scmp.lt.s32.totalorder %s918_s8, %s911_s30 }
  0x2e   : > { %p915_p4 = pneg %p914_p9  ;;  %p921_p12 = por %p920_p11, %p919_p0 }
  0x30   : > { %p922_p13 = pnand %p921_p12, %p915_p4 }
  0x32   : > { %925 = shalt.err (!%p922_p13)
}
  0x33   : > { %s1537_s29 = smov 64   ;;  %s1538_s10 = smov 4  }
  0x34   : > { %783 = dma.hbm_to_vmem [thread:$0]  (!%p1241_p6), %s1236_s11, 256, %s1245_s13, %s1247_s28, %s1537_s29, %s1537_s29, %s1538_s10  }
  0x35   : > { %p81_p0 = scmp.ne.s32.totalorder %s1076_s16, %s1072_s15  ;;  %s1558_s12 = sshll.u32 %s1104_s23, 8 }
  0x36   : > { %s1285_s9 = scalar_lea.hbm %s1529_s2, %s1558_s12  ;;  %p709_p4 = scmp.ge.s32.totalorder %s1112_s25, 1 }
  0x37   : > { %s224_s8 = scalar_lea.vmem [#allocation8], %s1228_s7  ;;  %p239_p10 = scmp.lt.s32.totalorder %s1112_s25, 5 }
  0x38   : > { %s231_s1 = sshll.u32 %s224_s8, 4  ;;  %s1295_s11 = sadd.s32 4294967295, %s1112_s25   ;;  %s1362_s1 = int_to_ptr.vmem [resolvable:$true] %s231_s1 }
  0x39   : > { %p1290_p2 = pnand %p709_p4, %p239_p10  ;;  %s698_s13 = sadd.s32 4294967294, %s1112_s25  }
  0x3a   : > { %s35_s12 = sadd.s32 1, %s1108_s24  ;;  %s42_s7 = sadd.s32 1, %s1092_s20 }
  0x3b   : > { %s1559_s26 = scalar_select %p1290_p2, 1, 0 }
  0x3c   : > { %s1595_s12 = smov (!%p1207_p1, %s35_s12), %s1108_s24  ;;  %p49_p3 = scmp.ne.s32.totalorder %s1092_s20, %s1088_s19 }
  0x3d   : > { %p37_p5 = scmp.ge.s32.totalorder %s1595_s12, 2  ;;  %p55_p7 = scmp.ne.s32.totalorder %s1088_s19, %s1084_s18 }
  0x3e   : > { %p1560_p9 = scmp.eq.s32.totalorder %s1112_s25, 0  ;;  %p56_p12 = scmp.eq.s32.totalorder %s1295_s11, 0 }
  0x3f   : > { %s1597_s12 = smov (%p37_p5, %s1595_s12), 0  ;;  %p152_p4 = scmp.eq.s32.totalorder %s1295_s11, 3 }
  0x40   : > { %p1309_p11 = por %p1560_p9, %p49_p3  ;;  %1562 = sst [smem:[#allocation19_spill]] %s1597_s12 }
  0x41   : > { %p1319_p1 = por %p56_p12, %p55_p7  ;;  %p1326_p13 = por %p81_p0, %p56_p12 }
  0x42   : > { %s39_s8 = ssub.s32 %s1108_s24, %s1597_s12  ;;  %p158_p9 = scmp.eq.s32.totalorder %s698_s13, 3 }
  0x43   : > { %s1563_s27 = scalar_select %p1319_p1, 1, 0 }
  0x44   : > { %s1564_s5 = scalar_select %p1326_p13, 1, 0 }
  0x45   : > { %p40_p10 = scmp.eq.s32.totalorder %s39_s8, 0  ;;  %p1333_p8 = por %p152_p4, %p49_p3 }
  0x46   : > { %s181_s10 = sand.u32 1, %s1092_s20   ;;  %p1344_p5 = por %p158_p9, %p55_p7 }
  0x47   : > { %s1565_s29 = scalar_select %p1333_p8, 1, 0 }
  0x48   : > { %s1339_s23 = scalar_select %p40_p10, %s1092_s20, %s42_s7  }
  0x49   : > { %s1566_s6 = scalar_select %p1344_p5, 1, 0 }
  0x4a   : > { %s701_s15 = sshll.u32 %s181_s10, 2  ;;  %s702_s17 = sshll.u32 %s1108_s24, 6 }
  0x4b   : > { %s1352_s12 = scalar_lea.hbm %s1527_s0, %s702_s17  ;;  %s185_s13 = scalar_lea.vmem [#allocation3], %s701_s15 }
  0x4c   : > { %s192_s8 = sshll.u32 %s185_s13, 4  ;;  %p1567_p0 = scmp.lt.s32.totalorder %s1112_s25, 4  ;;  %s1364_s8 = int_to_ptr.vmem [resolvable:$true] %s192_s8 }
  0x4d   : > { %s182_s4 = scalar_lea.sflag [#allocation4], %s181_s10  ;;  %s926_s17 = scalar_lea.hbm %s1352_s12, 64 }
  0x4e   : > { %p1358_p3 = pnand %p1567_p0, %p1309_p11  ;;  %p927_p7 = scmp.ne.s32.totalorder %s1352_s12, %s926_s17 }
  0x4f   : > { %s931_s15 = scalar_lea.hbm %s1527_s0, 128  ;;  %p932_p11 = scmp.lt.u32.totalorder %s1352_s12, %s1527_s0 }
  0x50   : > { %p928_p12 = pneg %p1358_p3  ;;  %p933_p9 = scmp.lt.u32.totalorder %s931_s15, %s926_s17 }
  0x51   : > { %p935_p5 = scmp.lt.u32.totalorder %s926_s17, %s1352_s12 }
  0x52   : > { %p929_p4 = pnand %p928_p12, %p927_p7  ;;  %p934_p0 = por %p933_p9, %p932_p11 }
  0x54   : > { %p930_p10 = pneg %p929_p4  ;;  %p936_p8 = por %p935_p5, %p934_p0 }
  0x56   : > { %p937_p13 = pnand %p936_p8, %p930_p10 }
  0x58   : > { %940 = shalt.err (!%p937_p13)
}
  0x59   : > { %s941_s10 = scalar_lea.vmem %s1364_s8, 64  ;;  %s1117_s22 = smov [#allocation3]  }
  0x5a   : > { %p942_p7 = scmp.ne.s32.totalorder %s1364_s8, %s941_s10  ;;  %s946_s30 = sshll.u32 %s1117_s22, 4  ;;  %s947_s30 = int_to_ptr.vmem [resolvable:$false] %s946_s30 }
  0x5b   : > { %s948_s24 = scalar_lea.vmem %s947_s30, 128  ;;  %p949_p2 = scmp.lt.s32.totalorder %s1364_s8, %s947_s30 }
  0x5c   : > { %p944_p4 = pnand %p942_p7, %p928_p12  ;;  %p950_p11 = scmp.lt.s32.totalorder %s948_s24, %s941_s10 }
  0x5e   : > { %p945_p1 = pneg %p944_p4  ;;  %p951_p9 = por %p950_p11, %p949_p2 }
  0x60   : > { %p952_p5 = pnand %p951_p9, %p945_p1 }
  0x62   : > { %955 = shalt.err (!%p952_p5)
}
  0x63   : > { %780 = dma.hbm_to_vmem [thread:$0]  (!%p1358_p3), %s1352_s12, 64, %s1364_s8, %s182_s4  }
  0x64   : > { %s956_s17 = scalar_lea.hbm %s1285_s9, 256  ;;  %p1569_p13 = pneg %p1241_p6 }
  0x65   : > { %p957_p8 = scmp.ne.s32.totalorder %s1285_s9, %s956_s17  ;;  %s961_s10 = scalar_lea.hbm %s1529_s2, 512 }
  0x66   : > { %p962_p2 = scmp.lt.u32.totalorder %s1285_s9, %s1529_s2  ;;  %p963_p1 = scmp.lt.u32.totalorder %s961_s10, %s956_s17 }
  0x67   : > { %p959_p12 = pnand %p957_p8, %p1569_p13  ;;  %p965_p7 = scmp.lt.u32.totalorder %s956_s17, %s1285_s9 }
  0x68   : > { %p964_p0 = por %p963_p1, %p962_p2 }
  0x69   : > { %p960_p10 = pneg %p959_p12 }
  0x6a   : > { %p966_p4 = por %p965_p7, %p964_p0 }
  0x6c   : > { %p967_p11 = pnand %p966_p4, %p960_p10 }
  0x6e   : > { %970 = shalt.err (!%p967_p11)
}
  0x6f   : > { %s971_s12 = scalar_lea.vmem %s1362_s1, 256  ;;  %p1570_p9 = pmov %p1569_p13 }
  0x70   : > { %p972_p3 = scmp.ne.s32.totalorder %s1362_s1, %s971_s12  ;;  %s1118_s8 = smov [#allocation8]  }
  0x71   : > { %s976_s4 = sshll.u32 %s1118_s8, 4  ;;  %s977_s4 = int_to_ptr.vmem [resolvable:$false] %s976_s4 }
  0x72   : > { %p974_p5 = pnand %p972_p3, %p1570_p9  ;;  %s978_s30 = scalar_lea.vmem %s977_s4, 512 }
  0x73   : > { %p979_p13 = scmp.lt.s32.totalorder %s1362_s1, %s977_s4  ;;  %p980_p12 = scmp.lt.s32.totalorder %s978_s30, %s971_s12 }
  0x74   : > { %p975_p8 = pneg %p974_p5 }
  0x75   : > { %p981_p2 = por %p980_p12, %p979_p13 }
  0x77   : > { %p982_p1 = pnand %p981_p2, %p975_p8 }
  0x79   : > { %985 = shalt.err (!%p982_p1)
}
  0x7a   : > { %s1571_s24 = smov 4   ;;  %s1572_s17 = smov 64  }
  0x7b   : > { %786 = dma.hbm_to_vmem [thread:$0]  (!%p1241_p6), %s1285_s9, 256, %s1362_s1, %s1247_s28, %s1572_s17, %s1572_s17, %s1571_s24  }
  0x7c   : > { %p1573_p10 = scmp.ne.s32.totalorder %s1559_s26, 0 }
  0x7d   : > { %s1421_s15 = sand.u32 (!%p1573_p10), 1, %s1088_s19   ;;  %p1574_p0 = scmp.ne.s32.totalorder (!%p1573_p10), %s1563_s27, 0 }
  0x7e   : > { %243 = sbr.rel (%p1573_p10) target bundleno = 1489 (0x5d1), region = 36  ;;  %s710_s13 = sshll.u32 (!%p1573_p10), %s1421_s15, 2 }
  0x7f   : > { %s246_s10 = scalar_lea.sflag (!%p1573_p10), [#allocation4], %s1421_s15  ;;  %s249_s22 = scalar_lea.vmem (!%p1573_p10), [#allocation3], %s710_s13 }
  0x85   : > { %1059 = dma.done.wait (%p1574_p0), %s246_s10, 64  }
  0x86   : > { %1061 = vsyncadd (%p1574_p0), %s246_s10, 4294967232  ;;  %s254_s1 = sand.u32 1, %s1295_s11   ;;  %s256_s26 = sand.u32 1, %s1076_s16  }
  0x87   : > { %s1431_s14 = sshll.u32 %s256_s26, 4  ;;  %s255_s28 = scalar_lea.sflag [#allocation7], %s254_s1 }
  0x88   : > { %s258_s9 = scalar_lea.vmem [#allocation6], %s1431_s14  ;;  %p1575_p6 = scmp.ne.s32.totalorder %s1564_s5, 0 }
  0x8a   : > { %1063 = dma.done.wait (%p1575_p6), %s255_s28, 512  }
  0x8b   : > { %1065 = vsyncadd (%p1575_p6), %s255_s28, 4294966784  ;;  %s713_s7 = sshll.u32 %s1421_s15, 3  ;;  %s267_s27 = scalar_lea.vmem [#allocation8], %s1431_s14 }
  0x8c   : > { %s1440_s12 = scalar_lea.vmem [#allocation9], %s713_s7  ;;  %p714_p7 = scmp.ne.s32.totalorder %s1096_s21, 0 }
  0x8d   : > { %vm307_vm0 = vcmask (!%p714_p7), 261120   ;;  %v1119_v0 = vmov (!%p714_p7), 0.0  }
  0x8e   : > { %306 = sbr.rel (%p714_p7) target bundleno = 149 (0x95), region = 52  ;;  %308 = vst.msk [vmem:[#allocation2] sm:$0xff] (!%p714_p7), %vm307_vm0, %v1119_v0 }
  0x95 PF: > { %v888_v1 = vld [vmem:[%s258_s9] sm:$0xff]   ;;  %v1120_v2 = vmov 0.0   ;;  %v889_v3 = vld [vmem:[%s258_s9 + $0x8] sm:$0xff]   ;;  %vm1121_vm1 = vmmov 0   ;;  %vm326_vm2 = vcmask 261120   ;;  %s1122_s11 = smov 96  }
  0x96   : > { %741 = vmatprep.subr.bf16.mxu0 %v1120_v2  ;;  %749 = vmatprep.subr.bf16.mxu1 %v1120_v2  ;;  %v309_v4 = vld [vmem:[%s249_s22] sm:$0xf]  ;;  %vm420_vm3 = vcmask 64512   ;;  %s1123_s5 = smov 64   ;;  %v890_v22 = vld [vmem:[%s267_s27] sm:$0xff]   ;;  %vm438_vm4 = vcmask 1043456  }
  0x97   : > { %742 = vmatpush3.bf16.msra.mxu0 %v888_v1  ;;  %745 = vmatprep.mubr.msk.bf16.mxu0 %vm1121_vm1, %v1120_v2  ;;  %v891_v23 = vld [vmem:[%s267_s27 + $0x8] sm:$0xff]   ;;  %v482_v35 = vld [vmem:[#allocation2] sm:$0xff]  ;;  %p723_p4 = scmp.ne.s32.totalorder %s1096_s21, 1 }
  0x98   : > { %743 = vmatprep.subr.bf16.mxu0 %v1120_v2  ;;  %751 = vmatprep.mubr.msk.bf16.mxu1 %vm1121_vm1, %v1120_v2  ;;  %v724_v42 = vld [vmem:[%s1530_s3] ss:$0 sm:$0xff] (!%p723_p4) }
  0x9b   : > { %744 = vmatpush3.bf16.msra.mxu0 %v889_v3 }
  0x9c   : > { %755 = vmatprep.subr.bf16.mxu0 %v1120_v2 }
  0x9e   : > { %746 = vmatmul.mubr.msk.bf16.vlgmr.msra.gmra.mrb[0].mxu0 %vm326_vm2, %v309_v4 }
  0x9f   : > { %757 = vmatprep.mubr.msk.bf16.mxu0 %vm1121_vm1, %v1120_v2 }
 0x171   : > { %v364_v5 = vpop.f32.mrb[0].mxu0 }
 0x172   : > { %v370_v6 = vpack.c.bf16 %v364_v5, %v364_v5  ;;  %v747_v7 = vpop.f32.mrb[1].mxu0 }
 0x173   : > { %v367_v8 = vpop.f32.mrb[2].mxu0 }
 0x174   : > { %372 = vrot.lane.b32.xlu0 %v370_v6, %s1122_s11  ;;  %v748_v9 = vpop.f32.mrb[3].mxu0 }
 0x1e6   : > { %v373_v10 = vpop.permute.xlu0 %372 }
 0x1e7   : > { %v378_v11 = vsel %vm326_vm2, %v373_v10, 0 }
 0x1e8   : > { %750 = vmatpush3.bf16.xpose.msra.mxu1 %v378_v11 }
 0x1e9   : > { %761 = vmatprep.subr.bf16.mxu1 %v1120_v2 }
 0x1ef   : > { %752 = vmatmul.mubr.msk.bf16.vlgmr.msra.gmra.mrb[0].mxu1 %vm326_vm2, %v370_v6 }
 0x1f0   : > { %765 = vmatprep.mubr.msk.bf16.mxu1 %vm1121_vm1, %v1120_v2  ;;  %762 = vmatpush3.bf16.msra.mxu1 %v890_v22 }
 0x1f1   : > { %763 = vmatprep.subr.bf16.mxu1 %v1120_v2 }
 0x1f4   : > { %764 = vmatpush3.bf16.msra.mxu1 %v891_v23 }
 0x2c2   : > { %v414_v12 = vpop.f32.mrb[0].mxu1 }
 0x2c3   : > { %v753_v13 = vpop.f32.mrb[1].mxu1  ;;  %v421_v14 = vsel %vm420_vm3, %v414_v12, -inf }
 0x2c4   : > { %422 = vmax.xlane.f32.xlu0 %v421_v14  ;;  %v417_v15 = vpop.f32.mrb[2].mxu1 }
 0x2c5   : > { %v754_v16 = vpop.f32.mrb[3].mxu1 }
 0x351   : > { %v423_v17 = vpop.xlane.xlu0 %422 }
 0x352   : > { %v424_v18 = vsub.f32 %v414_v12, %v423_v17 }
 0x354   : > { %v425_v19 = vmul.f32 1.442695, %v424_v18 }
 0x356   : > { %892 = vpow2.f32 %v425_v19 }
 0x360   : > { %v893_v20 = vpop.eup %892 }
 0x361   : > { %v427_v21 = vsel %vm420_vm3, %v893_v20, 0.0 }
 0x362   : > { %428 = vadd.xlane.f32.xlu1 %v427_v21 }
 0x373   : > { %433 = vrot.lane.b32.xlu1 %v370_v6, %s1123_s5 }
 0x3ef   : > { %v429_v24 = vpop.xlane.xlu1 %428 }
 0x3f0   : > { %894 = vrcp.f32 %v429_v24 }
 0x3f3   : > { %v434_v25 = vpop.permute.xlu1 %433 }
 0x3f4   : > { %v440_v26 = vsel %vm438_vm4, %v434_v25, 0 }
 0x3f5   : > { %756 = vmatpush3.bf16.msra.mxu0 %v440_v26 }
 0x3fa   : > { %v895_v27 = vpop.eup %894 }
 0x3fb   : > { %v431_v28 = vmul.f32 %v895_v27, %v893_v20 }
 0x3fd   : > { %v432_v29 = vpack.c.bf16 %v431_v28, %v431_v28 }
 0x3ff   : > { %758 = vmatmul.mubr.msk.bf16.vlgmr.msra.gmra.mrb[4].mxu0 %vm420_vm3, %v432_v29 }
 0x4d2   : > { %v476_v30 = vpop.f32.mrb[4].mxu0 }
 0x4d3   : > { %v483_v31 = vpack.c.bf16 %v476_v30, %v476_v30  ;;  %v759_v32 = vpop.f32.mrb[5].mxu0 }
 0x4d4   : > { %v479_v33 = vpop.f32.mrb[6].mxu0 }
 0x4d5   : > { %v760_v34 = vpop.f32.mrb[7].mxu0  ;;  %766 = vmatmul.mubr.msk.bf16.vlgmr.msra.gmra.mrb[4].mxu1 %vm326_vm2, %v483_v31 }
 0x5a5   : > { %548 = sbr.rel (%p723_p4) target bundleno = 1462 (0x5b6), region = 56 }
 0x5a8   : > { %v537_v36 = vpop.f32.mrb[4].mxu1 }
 0x5a9   : > { %v543_v37 = vadd.f32 %v537_v36, %v482_v35  ;;  %v767_v38 = vpop.f32.mrb[5].mxu1 }
 0x5aa   : > { %v540_v39 = vpop.f32.mrb[6].mxu1 }
 0x5ab   : > { %544 = vst.msk [vmem:[#allocation2] sm:$0xff] %vm326_vm2, %v543_v37  ;;  %v768_v40 = vpop.f32.mrb[7].mxu1 }
 0x5b2   : > { %v549_v41 = vld [vmem:[#allocation2] sm:$0xff] }
 0x5b3   : > { %v557_v43 = vadd.f32 %v724_v42, %v549_v41 }
 0x5b5   : > { %558 = vst.msk [vmem:[%s1440_s12] sm:$0xff] %vm326_vm2, %v557_v43 }
 0x5b6 PF: > { %s1576_s30 = sld [smem:[#allocation14_spill]]  ;;  %s1577_s10 = sld [smem:[#allocation21_spill]] }
 0x5b7   : > { %s573_s22 = sshll.u32 %s1440_s12, 4  ;;  %s560_s1 = scalar_lea.sflag [#allocation5], %s1421_s15  ;;  %s574_s22 = int_to_ptr.vmem [resolvable:$true] %s573_s22 }
 0x5b8   : > { %s986_s26 = scalar_lea.vmem %s574_s22, 128  ;;  %p1578_p3 = scmp.ne.s32.totalorder %s1565_s29, 0 }
 0x5b9   : > { %p987_p11 = scmp.ne.s32.totalorder %s574_s22, %s986_s26  ;;  %s1124_s14 = smov [#allocation9]  }
 0x5ba   : > { %s990_s28 = sshll.u32 %s1124_s14, 4  ;;  %s991_s28 = int_to_ptr.vmem [resolvable:$false] %s990_s28 }
 0x5bb   : > { %p988_p9 = pnand %p987_p11, %p1578_p3  ;;  %s992_s9 = scalar_lea.vmem %s991_s28, 256 }
 0x5bc   : > { %s726_s24 = sshll.u32 %s1576_s30, 7  ;;  %p993_p8 = scmp.lt.s32.totalorder %s574_s22, %s991_s28 }
 0x5bd   : > { %s1469_s21 = scalar_lea.hbm %s1577_s10, %s726_s24  ;;  %p989_p5 = pneg %p988_p9 }
 0x5be   : > { %p994_p13 = scmp.lt.s32.totalorder %s992_s9, %s986_s26 }
 0x5c0   : > { %p995_p12 = por %p994_p13, %p993_p8 }
 0x5c2   : > { %p996_p2 = pnand %p995_p12, %p989_p5 }
 0x5c4   : > { %999 = shalt.err (!%p996_p2)
}
 0x5c5   : > { %s1000_s15 = scalar_lea.hbm %s1469_s21, 128  ;;  %s1004_s12 = scalar_lea.hbm %s1577_s10, 256 }
 0x5c6   : > { %p1001_p1 = scmp.ne.s32.totalorder %s1469_s21, %s1000_s15  ;;  %p1005_p6 = scmp.lt.u32.totalorder %s1469_s21, %s1577_s10 }
 0x5c7   : > { %p1006_p7 = scmp.lt.u32.totalorder %s1004_s12, %s1000_s15  ;;  %p1008_p11 = scmp.lt.u32.totalorder %s1000_s15, %s1469_s21 }
 0x5c8   : > { %p1002_p10 = pnand %p1001_p1, %p1578_p3 }
 0x5c9   : > { %p1007_p4 = por %p1006_p7, %p1005_p6 }
 0x5ca   : > { %p1003_p0 = pneg %p1002_p10 }
 0x5cb   : > { %p1009_p9 = por %p1008_p11, %p1007_p4 }
 0x5cd   : > { %p1010_p5 = pnand %p1009_p9, %p1003_p0 }
 0x5cf   : > { %1013 = shalt.err (!%p1010_p5)
}
 0x5d0   : > { %775 = dma.vmem_to_hbm [thread:$0]  (%p1578_p3), %s574_s22, 128, %s1469_s21, %s560_s1  }
 0x5d1 PF: > { %p792_p8 = scmp.ge.s32.totalorder %s1112_s25, 2  ;;  %s585_s8 = sand.u32 1, %s1084_s18  }
 0x5d2   : > { %p1579_p13 = scmp.ne.s32.totalorder %s1566_s6, 0  ;;  %s586_s4 = scalar_lea.sflag [#allocation5], %s585_s8 }
 0x5d4   : > { %p788_p12 = pnand %p792_p8, %p1579_p13 }
 0x5d6   : > { %1067 = dma.done.wait (!%p788_p12), %s586_s4, 128  }
 0x5d7   : > { %1069 = vsyncadd (!%p788_p12), %s586_s4, 4294967168  ;;  %s23_s25 = sadd.s32 1, %s1112_s25   ;;  %s1580_s30 = sld [smem:[#allocation13_spill]] }
 0x5d8   : > { %p20_p2 = scmp.ge.s32.totalorder %s23_s25, 6   ;;  %s1581_s17 = sld [smem:[#allocation18_spill]] }
 0x5d9   : > { %s1582_s21 = sld [smem:[#allocation15_spill]]  ;;  %s1583_s22 = sld [smem:[#allocation16_spill]] }
 0x5da   : > { %s1584_s29 = sld [smem:[#allocation17_spill]]  ;;  %s1585_s24 = sld [smem:[#allocation19_spill]] }
 0x5db   : > { %s1586_s15 = smov %s1076_s16  ;;  %s1588_s18 = smov %s1088_s19 }
 0x5dc   : > { %s1589_s19 = smov %s1092_s20  ;;  %s1590_s20 = smov %s1339_s23 }
 0x5dd   : > { %s1587_s16 = smov %s1580_s30  ;;  %22 = sbr.rel (!%p20_p2) target bundleno = 14 (0xe), region = 113 }
 0x5e0   : > { %s1591_s23 = smov %s1584_s29 }
 0x5e4   :  { %591 = vsyncpa [#allocation4], 1 }
 0x5e5   :  { %593 = vsyncpa [#allocation4 + $0x1], 1 }
 0x5e6   :  { %594 = vsyncpa [#allocation7], 1 }
 0x5e7   :  { %596 = vsyncpa [#allocation7 + $0x1], 1 }
 0x5e8   :  { %597 = vsyncpa [#allocation5], 1 }
 0x5e9   :  { %599 = vsyncpa [#allocation5 + $0x1], 1 }

</bundles_post_ra>
